<compile_context>
chip_gen: v5e
topology: v5e:2x2
jax: 0.10.0
libtpu: 0.0.40
codegen_flags: <defaults>
</compile_context>

<pallas_src>
import functools

import jax
import jax.numpy as jnp
from jax.experimental import pallas as pl
from jax.experimental.pallas import tpu as pltpu

_LANE = 128
_SUBLANE = 8


@functools.lru_cache(maxsize=1)
def _vmem_capacity_bytes():
    """Physical per-core VMEM; conservative (v7x = 64 MiB) fallback on failure."""
    try:
        cap = getattr(pltpu.get_tpu_info(), "vmem_capacity_bytes", None)
        if cap:
            return int(cap)
    except Exception:
        pass
    return 64 * 1024 * 1024


def _pow2_floor(n):
    return 1 << (int(n).bit_length() - 1)


def _round_up(n, m):
    return ((n + m - 1) // m) * m


def _fold_lanes(x, acc_w):
    """Reduce (rows, acc_w * 2**j) -> (rows, acc_w) by pairwise lane-group adds.

    Every slice boundary is a multiple of acc_w (128-lane aligned), so each
    level lowers to vreg-aligned VPU adds — no cross-lane XLU reduction.
    """
    w = x.shape[1]
    while w > acc_w:
        h = w // 2
        x = x[:, :h] + x[:, h:w]
        w = h
    return x


def _dice_sums_kernel(p_ref, t_ref, inter_ref, denom_ref, *, acc_w, tail_width):
    """Accumulate per-row (row = n*C + c) lane-dense partial sums.

    p_ref/t_ref:         (block_r, block_m) VMEM tiles of the (R, M) inputs.
    inter_ref/denom_ref: (block_r, acc_w) accumulators, resident across the
                         innermost (reduction) grid axis.
    """
    k = pl.program_id(1)

    @pl.when(k == 0)
    def _():
        inter_ref[...] = jnp.zeros_like(inter_ref)
        denom_ref[...] = jnp.zeros_like(denom_ref)

    p = p_ref[...].astype(jnp.float32)
    t = t_ref[...].astype(jnp.float32)

    def full_tile():
        # Sequential folds so the product temporaries die before the sum ones
        # (keeps peak in-kernel VMEM temporaries ~1.5x tile).
        inter_ref[...] += _fold_lanes(p * t, acc_w)
        denom_ref[...] += _fold_lanes(p + t, acc_w)

    if tail_width is None:
        full_tile()
    else:
        last = pl.num_programs(1) - 1

        @pl.when(k < last)
        def _():
            full_tile()

        @pl.when(k == last)
        def _():
            # Ragged tail: only the first `tail_width` (static) columns of the
            # last reduction tile hold real data.  Handle it once with a plain
            # cross-lane reduce; every other step stays completely mask-free.
            vp = p[:, :tail_width]
            vt = t[:, :tail_width]
            inter_ref[:, 0:1] += jnp.sum(vp * vt, axis=1, keepdims=True)
            denom_ref[:, 0:1] += jnp.sum(vp + vt, axis=1, keepdims=True)


@jax.jit
def dice_loss(y_pred, y_true):
    """Equivalent of DiceLoss().forward(y_pred, y_true) with smooth = 1.0."""
    assert y_pred.shape == y_true.shape
    smooth = jnp.float32(1.0)

    N, C, H, W = y_pred.shape
    R = N * C
    M = H * W
    itemsize = jnp.dtype(y_pred.dtype).itemsize

    # (N, C, H, W) -> (N*C, H*W): contiguous view, no HBM data movement.
    p2 = y_pred.reshape(R, M)
    t2 = y_true.reshape(R, M)

    # --- Row tiling ----------------------------------------------------------
    if R > 512:
        block_r = 512
    elif R >= 16:
        # >= 2 row blocks so the "parallel" row axis has work for both v7x
        # TensorCores (same total bytes / ~same step count elsewhere).
        block_r = _round_up(pl.cdiv(R, 2), _SUBLANE)
    else:
        block_r = R              # full dim: legal even if not a multiple of 8
    r_steps = pl.cdiv(R, block_r)

    # --- Reduction (lane) tiling ---------------------------------------------
    vmem_cap = _vmem_capacity_bytes()
    tile_budget = max(512 * 1024, vmem_cap // 8)      # per input, per buffer

    if M <= _LANE:
        acc_w = M
        block_m = M              # single full-width block (legal)
    else:
        acc_w = _LANE
        full_groups = M // _LANE
        budget_groups = max(1, tile_budget // (block_r * itemsize * _LANE))
        # Power-of-two group count keeps the in-kernel fold purely pairwise.
        block_m = _pow2_floor(min(full_groups, budget_groups)) * _LANE
    k_steps = pl.cdiv(M, block_m)
    rem = M - (k_steps - 1) * block_m
    tail_width = None if rem == block_m else rem      # static tail width

    tile_bytes = block_r * block_m * itemsize
    # 2 inputs x 2 pipeline buffers + in-kernel temporaries + margin, capped
    # below physical per-core VMEM (critical on v7x where physical is 64 MiB).
    vmem_limit = int(min((7 * vmem_cap) // 8,
                         max(8 * tile_bytes + (16 << 20), 32 << 20)))

    kernel = functools.partial(
        _dice_sums_kernel, acc_w=acc_w, tail_width=tail_width)

    cost = pl.CostEstimate(
        flops=4 * R * M,
        transcendentals=0,
        bytes_accessed=2 * R * M * itemsize + 2 * R * acc_w * 4)

    inter, denom = pl.pallas_call(
        kernel,
        out_shape=(jax.ShapeDtypeStruct((R, acc_w), jnp.float32),
                   jax.ShapeDtypeStruct((R, acc_w), jnp.float32)),
        grid_spec=pltpu.PrefetchScalarGridSpec(
            num_scalar_prefetch=0,
            grid=(r_steps, k_steps),
            in_specs=[
                pl.BlockSpec((block_r, block_m), lambda r, k: (r, k)),
                pl.BlockSpec((block_r, block_m), lambda r, k: (r, k)),
            ],
            out_specs=[
                pl.BlockSpec((block_r, acc_w), lambda r, k: (r, 0)),
                pl.BlockSpec((block_r, acc_w), lambda r, k: (r, 0)),
            ],
        ),
        compiler_params=pltpu.CompilerParams(
            dimension_semantics=("parallel", "arbitrary"),
            vmem_limit_bytes=vmem_limit,
        ),
        cost_estimate=cost,
    )(p2, t2)

    # Tiny O(N*C) epilogue: fold the 128 lanes, per-channel Dice, mean.
    inter_c = inter.sum(axis=1).reshape(N, C).sum(axis=0)
    denom_c = denom.sum(axis=1).reshape(N, C).sum(axis=0)
    dscs = (2.0 * inter_c + smooth) / (denom_c + smooth)
    return (1.0 - jnp.mean(dscs)).astype(jnp.float32)


def _dice_loss_ref(y_pred, y_true, smooth=1.0):
    """Pure-JAX reference mirroring the PyTorch per-channel loop."""
    C = y_pred.shape[1]
    p = jnp.transpose(y_pred, (1, 0, 2, 3)).reshape(C, -1).astype(jnp.float32)
    t = jnp.transpose(y_true, (1, 0, 2, 3)).reshape(C, -1).astype(jnp.float32)
    inter = jnp.sum(p * t, axis=1)
    dscs = (2.0 * inter + smooth) / (jnp.sum(p, axis=1) + jnp.sum(t, axis=1) + smooth)
    return 1.0 - jnp.mean(dscs)


if __name__ == "__main__":
    key = jax.random.PRNGKey(0)
    k1, k2 = jax.random.split(key)

    N, C, H, W = 2, 4, 16, 16
    # "require sigmoid at the end of network" -> predictions in (0, 1)
    y_pred = jax.nn.sigmoid(jax.random.normal(k1, (N, C, H, W), dtype=jnp.float32))
    # binary ground-truth masks
    y_true = (jax.random.uniform(k2, (N, C, H, W)) > 0.5).astype(jnp.float32)

    loss = dice_loss(y_pred, y_true)
    jax.block_until_ready(loss)

    ref = _dice_loss_ref(y_pred, y_true)
    assert jnp.allclose(loss, ref, rtol=1e-5, atol=1e-5), (loss, ref)

    print("KERNEL_OK")
</pallas_src>

<mosaic_0001>
module attributes {stable_mosaic.version = 11 : i64} {
  func.func @_dice_sums_kernel(%arg0: i32, %arg1: i32, %arg2: memref<8x256xf32, #tpu.memory_space<vmem>>, %arg3: memref<8x256xf32, #tpu.memory_space<vmem>>, %arg4: memref<8x128xf32, #tpu.memory_space<vmem>>, %arg5: memref<8x128xf32, #tpu.memory_space<vmem>>) attributes {dimension_semantics = [#tpu.dimension_semantics<parallel>, #tpu.dimension_semantics<arbitrary>], iteration_bounds = array<i64: 1, 1>, scalar_prefetch = 0 : i64, scratch_operands = 0 : i64, tpu.core_type = #tpu.core_type<tc>, window_params = [{transform_indices = @transform_0, window_bounds = array<i64: 8, 256>}, {transform_indices = @transform_1, window_bounds = array<i64: 8, 256>}, {transform_indices = @transform_2, window_bounds = array<i64: 8, 128>}, {transform_indices = @transform_3, window_bounds = array<i64: 8, 128>}]} {
    %c0_i32 = arith.constant 0 : i32
    %0 = arith.cmpi eq, %arg1, %c0_i32 : i32
    %1 = arith.extui %0 : i1 to i32
    %c0_i32_0 = arith.constant 0 : i32
    %2 = arith.cmpi ne, %1, %c0_i32_0 : i32
    scf.if %2 {
      %cst = arith.constant 0.000000e+00 : f32
      %19 = vector.broadcast %cst : f32 to vector<8x128xf32>
      %c0_12 = arith.constant 0 : index
      %c0_13 = arith.constant 0 : index
      %20 = vector.load %arg4[%c0_12, %c0_13] : memref<8x128xf32, #tpu.memory_space<vmem>>, vector<8x128xf32>
      tpu.vector_store %arg4[%c0_12, %c0_13], %19 {strides = array<i32>} : memref<8x128xf32, #tpu.memory_space<vmem>>, vector<8x128xf32>,
      %cst_14 = arith.constant 0.000000e+00 : f32
      %21 = vector.broadcast %cst_14 : f32 to vector<8x128xf32>
      %c0_15 = arith.constant 0 : index
      %c0_16 = arith.constant 0 : index
      %22 = vector.load %arg5[%c0_15, %c0_16] : memref<8x128xf32, #tpu.memory_space<vmem>>, vector<8x128xf32>
      tpu.vector_store %arg5[%c0_15, %c0_16], %21 {strides = array<i32>} : memref<8x128xf32, #tpu.memory_space<vmem>>, vector<8x128xf32>,
    } else {
    }
    %c0 = arith.constant 0 : index
    %c0_1 = arith.constant 0 : index
    %3 = vector.load %arg2[%c0, %c0_1] : memref<8x256xf32, #tpu.memory_space<vmem>>, vector<8x256xf32>
    %c0_2 = arith.constant 0 : index
    %c0_3 = arith.constant 0 : index
    %4 = vector.load %arg3[%c0_2, %c0_3] : memref<8x256xf32, #tpu.memory_space<vmem>>, vector<8x256xf32>
    %c0_4 = arith.constant 0 : index
    %c0_5 = arith.constant 0 : index
    %5 = vector.load %arg4[%c0_4, %c0_5] : memref<8x128xf32, #tpu.memory_space<vmem>>, vector<8x128xf32>
    %6 = arith.mulf %3, %4 : vector<8x256xf32>
    %7 = vector.extract_strided_slice %6 {offsets = [0, 0], sizes = [8, 128], strides = [1, 1]} : vector<8x256xf32> to vector<8x128xf32>
    %8 = vector.extract_strided_slice %6 {offsets = [0, 128], sizes = [8, 128], strides = [1, 1]} : vector<8x256xf32> to vector<8x128xf32>
    %9 = arith.addf %7, %8 : vector<8x128xf32>
    %10 = arith.addf %5, %9 : vector<8x128xf32>
    %c0_6 = arith.constant 0 : index
    %c0_7 = arith.constant 0 : index
    %11 = vector.load %arg4[%c0_6, %c0_7] : memref<8x128xf32, #tpu.memory_space<vmem>>, vector<8x128xf32>
    tpu.vector_store %arg4[%c0_6, %c0_7], %10 {strides = array<i32>} : memref<8x128xf32, #tpu.memory_space<vmem>>, vector<8x128xf32>,
    %c0_8 = arith.constant 0 : index
    %c0_9 = arith.constant 0 : index
    %12 = vector.load %arg5[%c0_8, %c0_9] : memref<8x128xf32, #tpu.memory_space<vmem>>, vector<8x128xf32>
    %13 = arith.addf %3, %4 : vector<8x256xf32>
    %14 = vector.extract_strided_slice %13 {offsets = [0, 0], sizes = [8, 128], strides = [1, 1]} : vector<8x256xf32> to vector<8x128xf32>
    %15 = vector.extract_strided_slice %13 {offsets = [0, 128], sizes = [8, 128], strides = [1, 1]} : vector<8x256xf32> to vector<8x128xf32>
    %16 = arith.addf %14, %15 : vector<8x128xf32>
    %17 = arith.addf %12, %16 : vector<8x128xf32>
    %c0_10 = arith.constant 0 : index
    %c0_11 = arith.constant 0 : index
    %18 = vector.load %arg5[%c0_10, %c0_11] : memref<8x128xf32, #tpu.memory_space<vmem>>, vector<8x128xf32>
    tpu.vector_store %arg5[%c0_10, %c0_11], %17 {strides = array<i32>} : memref<8x128xf32, #tpu.memory_space<vmem>>, vector<8x128xf32>,
    return
  }
  func.func @transform_0(%arg0: i32, %arg1: i32) -> (i32, i32) {
    %c0_i32 = arith.constant 0 : i32
    return %arg0, %arg1 : i32, i32
  }
  func.func @transform_1(%arg0: i32, %arg1: i32) -> (i32, i32) {
    %c0_i32 = arith.constant 0 : i32
    return %arg0, %arg1 : i32, i32
  }
  func.func @transform_2(%arg0: i32, %arg1: i32) -> (i32, i32) {
    %c0_i32 = arith.constant 0 : i32
    %c0_i32_0 = arith.constant 0 : i32
    return %arg0, %c0_i32 : i32, i32
  }
  func.func @transform_3(%arg0: i32, %arg1: i32) -> (i32, i32) {
    %c0_i32 = arith.constant 0 : i32
    %c0_i32_0 = arith.constant 0 : i32
    return %arg0, %c0_i32 : i32, i32
  }
}

</mosaic_0001>

<bundles_post_ra>
// kernel: dice_loss.1
= control target key start
LH: loop header
LB: loop body
LE: loop exit
PB: predicated region body
PF: predicated region fallthrough
CT: control target
= control target key end

     0   :  { %s82_s0 = inlined_call_operand.vmem [shape: f32[8,256], index: 0, kind: input, shape index: {}]   ;;  %s83_s1 = inlined_call_operand.vmem [shape: f32[8,256], index: 1, kind: input, shape index: {}]   ;;  %s84_s2 = inlined_call_operand.vmem [shape: f32[8,128], index: 2, kind: output, shape index: {0}]   ;;  %s85_s3 = inlined_call_operand.vmem [shape: f32[8,128], index: 3, kind: output, shape index: {1}]  }
   0x1   :  { %v19_v0 = vld [vmem:[%s82_s0] sm:$0xff]  ;;  %v20_v1 = vld [vmem:[%s82_s0 + $0x8] sm:$0xff] }
   0x2   :  { %v21_v2 = vld [vmem:[%s83_s1] sm:$0xff]  ;;  %v22_v3 = vld [vmem:[%s83_s1 + $0x8] sm:$0xff] }
   0x3   :  { %v24_v4 = vmul.f32 %v21_v2, %v19_v0  ;;  %v30_v5 = vadd.f32 %v21_v2, %v19_v0  ;;  %v25_v6 = vmul.f32 %v22_v3, %v20_v1  ;;  %v31_v7 = vadd.f32 %v22_v3, %v20_v1 }
   0x5   :  { %v26_v8 = vadd.f32 %v25_v6, %v24_v4  ;;  %v32_v9 = vadd.f32 %v31_v7, %v30_v5 }
   0x7   :  { %28 = vst [vmem:[%s84_s2] sm:$0xff] %v26_v8 }
   0x8   :  { %34 = vst [vmem:[%s85_s3] sm:$0xff] %v32_v9 }

</bundles_post_ra>
